<compile_context>
chip_gen: v7x
topology: tpu7x:2x2x1
jax: 0.10.0
libtpu: 0.0.40
codegen_flags: <defaults>
</compile_context>

<pallas_src>
import jax
import jax.numpy as jnp
from jax.experimental import pallas as pl
from jax.experimental.pallas import tpu as pltpu


# ----------------------------------------------------------------------------
# helpers
# ----------------------------------------------------------------------------

def _round_up(x, m):
    return ((x + m - 1) // m) * m


def _chip_defaults():
    """Per-generation (tm, ti, vmem cap) defaults; safe fallback if unknown."""
    kind = ""
    try:
        kind = jax.devices()[0].device_kind.lower()
    except Exception:
        pass
    if "v7" in kind or "7x" in kind:
        # 64 MiB VMEM part: keep the plan (incl. f32 dot temp) under ~56 MiB.
        return {"tm": 384, "ti": 256, "vmem_cap": 56 * 2**20}
    if "v6" in kind:
        # 918 TF/s vs ~1.35 TB/s -> need tm ~>= 680 to leave the HBM roofline.
        return {"tm": 768, "ti": 512, "vmem_cap": 100 * 2**20}
    if "v5 lite" in kind or "v5e" in kind or "v5lite" in kind:
        # crossover ~240; 512 gives slack for MXU ramp/drain + per-step overhead.
        return {"tm": 512, "ti": 512, "vmem_cap": 96 * 2**20}
    # Unknown chip: conservative cap.
    return {"tm": 512, "ti": 512, "vmem_cap": 64 * 2**20}


def _derive_vmem_limit(tm, ti, H, act_itemsize, w_itemsize, cap):
    """Explicit VMEM budget for the chosen tiling (conservative: assumes the
    x tile is double-buffered even when Buffered(1) is honored)."""
    wgu_bufs = 2 * H * (2 * ti) * w_itemsize      # fused gate+up tile, 2 buffers
    wd_bufs  = 2 * ti * H * w_itemsize            # down-proj tile, 2 buffers
    x_bufs   = 2 * tm * H * act_itemsize
    o_bufs   = 2 * tm * H * act_itemsize
    acc      = tm * H * 4                         # f32 accumulator scratch
    dot_tmp  = tm * H * 4                         # f32 dot result before '+='
    gu_tmp   = tm * 2 * ti * 4 + tm * ti * (4 + w_itemsize)   # gu / h temporaries
    margin   = 4 * 2**20                          # Mosaic internal scratch
    est = wgu_bufs + wd_bufs + x_bufs + o_bufs + acc + dot_tmp + gu_tmp + margin
    return int(min(cap, max(est, 32 * 2**20)))


# ----------------------------------------------------------------------------
# kernel
# ----------------------------------------------------------------------------

def _mlp_kernel(x_ref, wgu_ref, wd_ref, o_ref, acc_ref):
    # x_ref:   (tm, H)      token tile (j-invariant)
    # wgu_ref: (H, 2*ti)    [gate_tile_j | up_tile_j], (in, out) layout
    # wd_ref:  (ti, H)      down_proj weight tile, (in, out) layout
    # o_ref:   (tm, H)      output tile (same block across the reduction axis)
    # acc_ref: (tm, H)      f32 accumulator scratch
    j = pl.program_id(1)

    @pl.when(j == 0)
    def _init():
        acc_ref[...] = jnp.zeros_like(acc_ref)

    ti = wd_ref.shape[0]
    x = x_ref[...]
    # One fused MXU matmul for gate and up, f32 accumulation.
    gu = jnp.dot(x, wgu_ref[...], preferred_element_type=jnp.float32)  # (tm, 2*ti)
    g = gu[:, :ti]          # lane-aligned split (ti is a multiple of 128)
    u = gu[:, ti:]
    # hidden_act == "silu" for Llama4; keep the activation math in f32.
    h = (g * jax.nn.sigmoid(g)) * u
    # Cast to the down-proj weight dtype (bf16) for the fast MXU path; the
    # partial down projection accumulates in f32.
    acc_ref[...] += jnp.dot(h.astype(wd_ref.dtype), wd_ref[...],
                            preferred_element_type=jnp.float32)

    @pl.when(j == pl.num_programs(1) - 1)
    def _store():
        o_ref[...] = acc_ref[...].astype(o_ref.dtype)


# ----------------------------------------------------------------------------
# weight preparation (one time, at parameter-load — NOT in the hot path)
# ----------------------------------------------------------------------------

def prepare_llama4_mlp_weights(w_gate, w_up, w_down, dtype=jnp.bfloat16, ti=None):
    """Convert nn.Linear (out, in) weights to the kernel layout.

    Returns (wgu_t, wd_t, ti):
      wgu_t: (H, 2*I_pad)  gate/up fused, interleaved per ti-tile:
             columns [j*2*ti : j*2*ti+ti] = gate tile j, next ti cols = up tile j
      wd_t:  (I_pad, H)    down_proj, (in, out) layout, zero-padded
      ti:    intermediate-dim tile the weights were laid out for (pass to the call)
    The zero padding of I contributes exactly zero to the output.
    """
    w_gate = jnp.asarray(w_gate)
    w_up = jnp.asarray(w_up)
    w_down = jnp.asarray(w_down)
    I, H = w_gate.shape
    assert w_up.shape == (I, H) and w_down.shape == (H, I)

    if ti is None:
        ti = _chip_defaults()["ti"]
    ti = max(128, min(int(ti), _round_up(I, 128)))
    ti = (ti // 128) * 128
    I_pad = _round_up(I, ti)

    wg_t = w_gate.T.astype(dtype)     # (H, I)
    wu_t = w_up.T.astype(dtype)       # (H, I)
    wd_t = w_down.T.astype(dtype)     # (I, H)
    if I_pad != I:
        wg_t = jnp.pad(wg_t, ((0, 0), (0, I_pad - I)))
        wu_t = jnp.pad(wu_t, ((0, 0), (0, I_pad - I)))
        wd_t = jnp.pad(wd_t, ((0, I_pad - I), (0, 0)))

    nt = I_pad // ti
    wgu_t = jnp.concatenate(
        [wg_t.reshape(H, nt, ti), wu_t.reshape(H, nt, ti)], axis=2
    ).reshape(H, 2 * I_pad)
    return wgu_t, wd_t, ti


# ----------------------------------------------------------------------------
# forward wrapper
# ----------------------------------------------------------------------------

_SINGLE_BUFFER_X_OK = None   # feature-probe cache for pl.Buffered(1) on x


def _run_pallas(x2, wgu_t, wd_t, *, tm, ti, H, grid, out_dtype,
                vmem_limit_bytes, single_buffer_x):
    if single_buffer_x:
        # x block index is constant across the reduction axis -> never
        # re-DMA'd; a single pipeline buffer reclaims tm*H*itemsize of VMEM.
        x_spec = pl.BlockSpec((tm, H), lambda i, j: (i, 0),
                              pipeline_mode=pl.Buffered(1))
    else:
        x_spec = pl.BlockSpec((tm, H), lambda i, j: (i, 0))

    return pl.pallas_call(
        _mlp_kernel,
        out_shape=jax.ShapeDtypeStruct((x2.shape[0], H), out_dtype),
        grid_spec=pltpu.PrefetchScalarGridSpec(
            num_scalar_prefetch=0,
            grid=grid,                                       # (tokens, I) — reduction last
            in_specs=[
                x_spec,                                      # x token tile
                pl.BlockSpec((H, 2 * ti), lambda i, j: (0, j)),  # fused gate|up tile
                pl.BlockSpec((ti, H), lambda i, j: (j, 0)),      # down-proj tile
            ],
            out_specs=pl.BlockSpec((tm, H), lambda i, j: (i, 0)),
            scratch_shapes=[pltpu.VMEM((tm, H), jnp.float32)],   # f32 accumulator
        ),
        compiler_params=pltpu.CompilerParams(
            dimension_semantics=("parallel", "arbitrary"),
            vmem_limit_bytes=int(vmem_limit_bytes),
        ),
    )(x2, wgu_t, wd_t)


def llama4_text_mlp(x, wgu_t, wd_t, ti, *, tm=None, vmem_limit_bytes=None,
                    single_buffer_x=True):
    """x: (..., H).  wgu_t/wd_t/ti from prepare_llama4_mlp_weights."""
    global _SINGLE_BUFFER_X_OK

    orig_shape = x.shape
    H = orig_shape[-1]
    x2 = x.reshape(-1, H)
    # Keep the matmuls on the fast homogeneous-dtype MXU path.
    if x2.dtype != wgu_t.dtype:
        x2 = x2.astype(wgu_t.dtype)

    T = x2.shape[0]
    I = wd_t.shape[0]
    assert wgu_t.shape == (H, 2 * I)
    assert ti % 128 == 0 and I % ti == 0, \
        "intermediate dim must be padded to ti at weight-prep time"

    cfg = _chip_defaults()
    if tm is None:
        tm = cfg["tm"]
    # Sublane-packing granule: 8 rows per sublane-group at 32-bit, 16 at bf16,
    # 32 at int8/fp8.
    granule = 8 * max(1, 4 // jnp.dtype(x2.dtype).itemsize)
    tm = _round_up(max(1, min(int(tm), T)), granule)
    T_pad = _round_up(T, tm)
    if T_pad != T:
        x2 = jnp.pad(x2, ((0, T_pad - T), (0, 0)))

    grid = (T_pad // tm, I // ti)

    if vmem_limit_bytes is None:
        vmem_limit_bytes = _derive_vmem_limit(
            tm, ti, H,
            jnp.dtype(x2.dtype).itemsize, jnp.dtype(wgu_t.dtype).itemsize,
            cfg["vmem_cap"])

    want_sb = bool(single_buffer_x) and (_SINGLE_BUFFER_X_OK is not False)
    kwargs = dict(tm=tm, ti=ti, H=H, grid=grid, out_dtype=x2.dtype,
                  vmem_limit_bytes=vmem_limit_bytes)
    try:
        out = _run_pallas(x2, wgu_t, wd_t, single_buffer_x=want_sb, **kwargs)
        if want_sb and _SINGLE_BUFFER_X_OK is None:
            out = jax.block_until_ready(out)   # surface any lowering issue once
            _SINGLE_BUFFER_X_OK = True
    except Exception:
        if not want_sb:
            raise
        _SINGLE_BUFFER_X_OK = False            # this build rejects Buffered(1)
        out = _run_pallas(x2, wgu_t, wd_t, single_buffer_x=False, **kwargs)

    if T_pad != T:
        out = out[:T]
    return out.reshape(orig_shape[:-1] + (H,))


# ----------------------------------------------------------------------------
# reference + self-test
# ----------------------------------------------------------------------------

def _reference(x, w_gate, w_up, w_down, dtype=jnp.bfloat16):
    """Mirrors the kernel's precision: bf16 operands, f32 accumulation, bf16 h."""
    xf = jnp.asarray(x).astype(dtype).astype(jnp.float32)
    wg = jnp.asarray(w_gate).astype(dtype).astype(jnp.float32)
    wu = jnp.asarray(w_up).astype(dtype).astype(jnp.float32)
    wd = jnp.asarray(w_down).astype(dtype).astype(jnp.float32)
    g = xf @ wg.T
    u = xf @ wu.T
    h = (jax.nn.silu(g) * u).astype(dtype).astype(jnp.float32)
    return (h @ wd.T).astype(dtype)


def _run_case(key, batch, seq, hidden, inter, x_dtype, ti, tm):
    kx, kg, ku, kd = jax.random.split(key, 4)
    x = jax.random.normal(kx, (batch, seq, hidden), jnp.float32).astype(x_dtype)
    # nn.Linear weights: (out_features, in_features), no bias.
    w_gate = jax.random.normal(kg, (inter, hidden), jnp.float32) * 0.02
    w_up   = jax.random.normal(ku, (inter, hidden), jnp.float32) * 0.02
    w_down = jax.random.normal(kd, (hidden, inter), jnp.float32) * 0.02

    wgu_t, wd_t, ti_eff = prepare_llama4_mlp_weights(
        w_gate, w_up, w_down, jnp.bfloat16, ti=ti)
    out = llama4_text_mlp(x, wgu_t, wd_t, ti_eff, tm=tm)
    out = jax.block_until_ready(out)

    ref = _reference(x.reshape(-1, hidden), w_gate, w_up, w_down).reshape(
        batch, seq, hidden)
    err = jnp.max(jnp.abs(out.astype(jnp.float32) - ref.astype(jnp.float32)))
    assert out.shape == (batch, seq, hidden)
    assert err < 5e-3, f"mismatch vs reference: max abs err {err}"


if __name__ == "__main__":
    key = jax.random.PRNGKey(0)
    k1, k2 = jax.random.split(key)

    # Case 1: H=128, I=256, batch=2, seq=8, bf16 activations.
    #         ti=128 -> 2-step reduction over the intermediate axis.
    _run_case(k1, batch=2, seq=8, hidden=128, inter=256,
              x_dtype=jnp.bfloat16, ti=128, tm=None)

    # Case 2: H=128, I=384 (padded to 512 at prep time), seq=5 (token padding),
    #         f32 activations (exercises the wrapper-side bf16 cast).
    _run_case(k2, batch=2, seq=5, hidden=128, inter=384,
              x_dtype=jnp.float32, ti=256, tm=32)

    print("KERNEL_OK")
</pallas_src>

<mosaic_0001>
module attributes {stable_mosaic.version = 11 : i64} {
  func.func @_mlp_kernel(%arg0: i32, %arg1: i32, %arg2: memref<16x128xbf16, #tpu.memory_space<vmem>>, %arg3: memref<128x256xbf16, #tpu.memory_space<vmem>>, %arg4: memref<128x128xbf16, #tpu.memory_space<vmem>>, %arg5: memref<16x128xbf16, #tpu.memory_space<vmem>>, %arg6: memref<16x128xf32, #tpu.memory_space<vmem>>) attributes {dimension_semantics = [#tpu.dimension_semantics<parallel>, #tpu.dimension_semantics<arbitrary>], iteration_bounds = array<i64: 1, 2>, scalar_prefetch = 0 : i64, scratch_operands = 1 : i64, tpu.core_type = #tpu.core_type<tc>, window_params = [{pipeline_mode = #tpu.pipeline_mode<synchronous>, transform_indices = @transform_0, window_bounds = array<i64: 16, 128>}, {transform_indices = @transform_1, window_bounds = array<i64: 128, 256>}, {transform_indices = @transform_2, window_bounds = array<i64: 128, 128>}, {transform_indices = @transform_3, window_bounds = array<i64: 16, 128>}]} {
    %c0_i32 = arith.constant 0 : i32
    %0 = arith.cmpi eq, %arg1, %c0_i32 : i32
    %1 = arith.extui %0 : i1 to i32
    %c0_i32_0 = arith.constant 0 : i32
    %2 = arith.cmpi ne, %1, %c0_i32_0 : i32
    scf.if %2 {
      %cst_13 = arith.constant 0.000000e+00 : f32
      %24 = vector.broadcast %cst_13 : f32 to vector<16x128xf32>
      %c0_14 = arith.constant 0 : index
      %c0_15 = arith.constant 0 : index
      %25 = vector.load %arg6[%c0_14, %c0_15] : memref<16x128xf32, #tpu.memory_space<vmem>>, vector<16x128xf32>
      tpu.vector_store %arg6[%c0_14, %c0_15], %24 {strides = array<i32>} : memref<16x128xf32, #tpu.memory_space<vmem>>, vector<16x128xf32>,
    } else {
    }
    %c0 = arith.constant 0 : index
    %c0_1 = arith.constant 0 : index
    %3 = vector.load %arg2[%c0, %c0_1] : memref<16x128xbf16, #tpu.memory_space<vmem>>, vector<16x128xbf16>
    %c0_2 = arith.constant 0 : index
    %c0_3 = arith.constant 0 : index
    %4 = vector.load %arg3[%c0_2, %c0_3] : memref<128x256xbf16, #tpu.memory_space<vmem>>, vector<128x256xbf16>
    %cst = arith.constant dense<0.000000e+00> : vector<16x256xf32>
    %5 = tpu.matmul %3, %4, %cst {dimension_numbers = #tpu.dot_dimension_numbers<[1], [0], [0], [1], [0, 0, 1, 1], [], []>} : vector<16x128xbf16>, vector<128x256xbf16>, vector<16x256xf32> -> vector<16x256xf32>
    %6 = vector.extract_strided_slice %5 {offsets = [0, 0], sizes = [16, 128], strides = [1, 1]} : vector<16x256xf32> to vector<16x128xf32>
    %7 = vector.extract_strided_slice %5 {offsets = [0, 128], sizes = [16, 128], strides = [1, 1]} : vector<16x256xf32> to vector<16x128xf32>
    %8 = arith.negf %6 : vector<16x128xf32>
    %9 = math.exp %8 : vector<16x128xf32>
    %cst_4 = arith.constant 1.000000e+00 : f32
    %10 = vector.broadcast %cst_4 : f32 to vector<16x128xf32>
    %11 = arith.addf %10, %9 : vector<16x128xf32>
    %12 = arith.divf %10, %11 : vector<16x128xf32>
    %13 = arith.mulf %6, %12 : vector<16x128xf32>
    %14 = arith.mulf %13, %7 : vector<16x128xf32>
    %c0_5 = arith.constant 0 : index
    %c0_6 = arith.constant 0 : index
    %15 = vector.load %arg6[%c0_5, %c0_6] : memref<16x128xf32, #tpu.memory_space<vmem>>, vector<16x128xf32>
    %16 = arith.truncf %14 : vector<16x128xf32> to vector<16x128xbf16>
    %c0_7 = arith.constant 0 : index
    %c0_8 = arith.constant 0 : index
    %17 = vector.load %arg4[%c0_7, %c0_8] : memref<128x128xbf16, #tpu.memory_space<vmem>>, vector<128x128xbf16>
    %cst_9 = arith.constant dense<0.000000e+00> : vector<16x128xf32>
    %18 = tpu.matmul %16, %17, %cst_9 {dimension_numbers = #tpu.dot_dimension_numbers<[1], [0], [0], [1], [0, 0, 1, 1], [], []>} : vector<16x128xbf16>, vector<128x128xbf16>, vector<16x128xf32> -> vector<16x128xf32>
    %19 = arith.addf %15, %18 : vector<16x128xf32>
    %c0_10 = arith.constant 0 : index
    %c0_11 = arith.constant 0 : index
    %20 = vector.load %arg6[%c0_10, %c0_11] : memref<16x128xf32, #tpu.memory_space<vmem>>, vector<16x128xf32>
    tpu.vector_store %arg6[%c0_10, %c0_11], %19 {strides = array<i32>} : memref<16x128xf32, #tpu.memory_space<vmem>>, vector<16x128xf32>,
    %c1_i32 = arith.constant 1 : i32
    %21 = arith.cmpi eq, %arg1, %c1_i32 : i32
    %22 = arith.extui %21 : i1 to i32
    %c0_i32_12 = arith.constant 0 : i32
    %23 = arith.cmpi ne, %22, %c0_i32_12 : i32
    scf.if %23 {
      %c0_13 = arith.constant 0 : index
      %c0_14 = arith.constant 0 : index
      %24 = vector.load %arg6[%c0_13, %c0_14] : memref<16x128xf32, #tpu.memory_space<vmem>>, vector<16x128xf32>
      %25 = arith.truncf %24 : vector<16x128xf32> to vector<16x128xbf16>
      %c0_15 = arith.constant 0 : index
      %c0_16 = arith.constant 0 : index
      %26 = vector.load %arg5[%c0_15, %c0_16] : memref<16x128xbf16, #tpu.memory_space<vmem>>, vector<16x128xbf16>
      tpu.vector_store %arg5[%c0_15, %c0_16], %25 {strides = array<i32>} : memref<16x128xbf16, #tpu.memory_space<vmem>>, vector<16x128xbf16>,
    } else {
    }
    return
  }
  func.func @transform_0(%arg0: i32, %arg1: i32) -> (i32, i32) {
    %c0_i32 = arith.constant 0 : i32
    %c0_i32_0 = arith.constant 0 : i32
    return %arg0, %c0_i32 : i32, i32
  }
  func.func @transform_1(%arg0: i32, %arg1: i32) -> (i32, i32) {
    %c0_i32 = arith.constant 0 : i32
    %c0_i32_0 = arith.constant 0 : i32
    return %c0_i32, %arg1 : i32, i32
  }
  func.func @transform_2(%arg0: i32, %arg1: i32) -> (i32, i32) {
    %c0_i32 = arith.constant 0 : i32
    %c0_i32_0 = arith.constant 0 : i32
    return %arg1, %c0_i32 : i32, i32
  }
  func.func @transform_3(%arg0: i32, %arg1: i32) -> (i32, i32) {
    %c0_i32 = arith.constant 0 : i32
    %c0_i32_0 = arith.constant 0 : i32
    return %arg0, %c0_i32 : i32, i32
  }
}

module attributes {stable_mosaic.version = 11 : i64} {
  func.func @_mlp_kernel(%arg0: i32, %arg1: i32, %arg2: memref<16x128xbf16, #tpu.memory_space<vmem>>, %arg3: memref<128x256xbf16, #tpu.memory_space<vmem>>, %arg4: memref<128x128xbf16, #tpu.memory_space<vmem>>, %arg5: memref<16x128xbf16, #tpu.memory_space<vmem>>, %arg6: memref<16x128xf32, #tpu.memory_space<vmem>>) attributes {dimension_semantics = [#tpu.dimension_semantics<parallel>, #tpu.dimension_semantics<arbitrary>], iteration_bounds = array<i64: 1, 2>, scalar_prefetch = 0 : i64, scratch_operands = 1 : i64, tpu.core_type = #tpu.core_type<tc>, window_params = [{transform_indices = @transform_0, window_bounds = array<i64: 16, 128>}, {transform_indices = @transform_1, window_bounds = array<i64: 128, 256>}, {transform_indices = @transform_2, window_bounds = array<i64: 128, 128>}, {transform_indices = @transform_3, window_bounds = array<i64: 16, 128>}]} {
    %c0_i32 = arith.constant 0 : i32
    %0 = arith.cmpi eq, %arg1, %c0_i32 : i32
    %1 = arith.extui %0 : i1 to i32
    %c0_i32_0 = arith.constant 0 : i32
    %2 = arith.cmpi ne, %1, %c0_i32_0 : i32
    scf.if %2 {
      %cst_13 = arith.constant 0.000000e+00 : f32
      %24 = vector.broadcast %cst_13 : f32 to vector<16x128xf32>
      %c0_14 = arith.constant 0 : index
      %c0_15 = arith.constant 0 : index
      %25 = vector.load %arg6[%c0_14, %c0_15] : memref<16x128xf32, #tpu.memory_space<vmem>>, vector<16x128xf32>
      tpu.vector_store %arg6[%c0_14, %c0_15], %24 {strides = array<i32>} : memref<16x128xf32, #tpu.memory_space<vmem>>, vector<16x128xf32>,
    } else {
    }
    %c0 = arith.constant 0 : index
    %c0_1 = arith.constant 0 : index
    %3 = vector.load %arg2[%c0, %c0_1] : memref<16x128xbf16, #tpu.memory_space<vmem>>, vector<16x128xbf16>
    %c0_2 = arith.constant 0 : index
    %c0_3 = arith.constant 0 : index
    %4 = vector.load %arg3[%c0_2, %c0_3] : memref<128x256xbf16, #tpu.memory_space<vmem>>, vector<128x256xbf16>
    %cst = arith.constant dense<0.000000e+00> : vector<16x256xf32>
    %5 = tpu.matmul %3, %4, %cst {dimension_numbers = #tpu.dot_dimension_numbers<[1], [0], [0], [1], [0, 0, 1, 1], [], []>} : vector<16x128xbf16>, vector<128x256xbf16>, vector<16x256xf32> -> vector<16x256xf32>
    %6 = vector.extract_strided_slice %5 {offsets = [0, 0], sizes = [16, 128], strides = [1, 1]} : vector<16x256xf32> to vector<16x128xf32>
    %7 = vector.extract_strided_slice %5 {offsets = [0, 128], sizes = [16, 128], strides = [1, 1]} : vector<16x256xf32> to vector<16x128xf32>
    %8 = arith.negf %6 : vector<16x128xf32>
    %9 = math.exp %8 : vector<16x128xf32>
    %cst_4 = arith.constant 1.000000e+00 : f32
    %10 = vector.broadcast %cst_4 : f32 to vector<16x128xf32>
    %11 = arith.addf %10, %9 : vector<16x128xf32>
    %12 = arith.divf %10, %11 : vector<16x128xf32>
    %13 = arith.mulf %6, %12 : vector<16x128xf32>
    %14 = arith.mulf %13, %7 : vector<16x128xf32>
    %c0_5 = arith.constant 0 : index
    %c0_6 = arith.constant 0 : index
    %15 = vector.load %arg6[%c0_5, %c0_6] : memref<16x128xf32, #tpu.memory_space<vmem>>, vector<16x128xf32>
    %16 = arith.truncf %14 : vector<16x128xf32> to vector<16x128xbf16>
    %c0_7 = arith.constant 0 : index
    %c0_8 = arith.constant 0 : index
    %17 = vector.load %arg4[%c0_7, %c0_8] : memref<128x128xbf16, #tpu.memory_space<vmem>>, vector<128x128xbf16>
    %cst_9 = arith.constant dense<0.000000e+00> : vector<16x128xf32>
    %18 = tpu.matmul %16, %17, %cst_9 {dimension_numbers = #tpu.dot_dimension_numbers<[1], [0], [0], [1], [0, 0, 1, 1], [], []>} : vector<16x128xbf16>, vector<128x128xbf16>, vector<16x128xf32> -> vector<16x128xf32>
    %19 = arith.addf %15, %18 : vector<16x128xf32>
    %c0_10 = arith.constant 0 : index
    %c0_11 = arith.constant 0 : index
    %20 = vector.load %arg6[%c0_10, %c0_11] : memref<16x128xf32, #tpu.memory_space<vmem>>, vector<16x128xf32>
    tpu.vector_store %arg6[%c0_10, %c0_11], %19 {strides = array<i32>} : memref<16x128xf32, #tpu.memory_space<vmem>>, vector<16x128xf32>,
    %c1_i32 = arith.constant 1 : i32
    %21 = arith.cmpi eq, %arg1, %c1_i32 : i32
    %22 = arith.extui %21 : i1 to i32
    %c0_i32_12 = arith.constant 0 : i32
    %23 = arith.cmpi ne, %22, %c0_i32_12 : i32
    scf.if %23 {
      %c0_13 = arith.constant 0 : index
      %c0_14 = arith.constant 0 : index
      %24 = vector.load %arg6[%c0_13, %c0_14] : memref<16x128xf32, #tpu.memory_space<vmem>>, vector<16x128xf32>
      %25 = arith.truncf %24 : vector<16x128xf32> to vector<16x128xbf16>
      %c0_15 = arith.constant 0 : index
      %c0_16 = arith.constant 0 : index
      %26 = vector.load %arg5[%c0_15, %c0_16] : memref<16x128xbf16, #tpu.memory_space<vmem>>, vector<16x128xbf16>
      tpu.vector_store %arg5[%c0_15, %c0_16], %25 {strides = array<i32>} : memref<16x128xbf16, #tpu.memory_space<vmem>>, vector<16x128xbf16>,
    } else {
    }
    return
  }
  func.func @transform_0(%arg0: i32, %arg1: i32) -> (i32, i32) {
    %c0_i32 = arith.constant 0 : i32
    %c0_i32_0 = arith.constant 0 : i32
    return %arg0, %c0_i32 : i32, i32
  }
  func.func @transform_1(%arg0: i32, %arg1: i32) -> (i32, i32) {
    %c0_i32 = arith.constant 0 : i32
    %c0_i32_0 = arith.constant 0 : i32
    return %c0_i32, %arg1 : i32, i32
  }
  func.func @transform_2(%arg0: i32, %arg1: i32) -> (i32, i32) {
    %c0_i32 = arith.constant 0 : i32
    %c0_i32_0 = arith.constant 0 : i32
    return %arg1, %c0_i32 : i32, i32
  }
  func.func @transform_3(%arg0: i32, %arg1: i32) -> (i32, i32) {
    %c0_i32 = arith.constant 0 : i32
    %c0_i32_0 = arith.constant 0 : i32
    return %arg0, %c0_i32 : i32, i32
  }
}

</mosaic_0001>

<bundles_post_ra>
// kernel: tpu_custom_call.1
= control target key start
LH: loop header
LB: loop body
LE: loop exit
PB: predicated region body
PF: predicated region fallthrough
CT: control target
= control target key end

     0   :  { %8 = vsyncpa [#allocation4], 0  ;;  %s1348_s0 = inlined_call_operand.hbm [shape: bf16[16,128], index: 0, kind: input, shape index: {}]   ;;  %s1349_s1 = inlined_call_operand.hbm [shape: bf16[128,512], index: 1, kind: input, shape index: {}]   ;;  %s1350_s2 = inlined_call_operand.hbm [shape: bf16[256,128], index: 2, kind: input, shape index: {}]   ;;  %s1351_s3 = inlined_call_operand.hbm [shape: bf16[16,128], index: 3, kind: output, shape index: {}]  }
   0x1   :  { %9 = vsyncpa [#allocation7], 0 }
   0x2   :  { %11 = vsyncpa [#allocation7 + $0x1], 0 }
   0x3   :  { %12 = vsyncpa [#allocation5], 0  ;;  %s1089_s12 = smov 0   ;;  %s1091_s13 = smov 0  }
   0x4   :  { %s1093_s14 = smov 0   ;;  %s1095_s15 = smov 0  }
   0x5   :  { %s1097_s16 = smov 0   ;;  %s1099_s17 = smov 0  }
   0x6 LB: > { %s27_s18 = sadd.s32 1, %s1048_s16  ;;  %s63_s19 = sadd.s32 1, %s1040_s14  ;;  %s1052_s17 = sphi %s1099_s17, %s18_s17   ;;  %s1048_s16 = sphi %s1097_s16, %s1373_s16   ;;  %s1044_s15 = sphi %s1095_s15, %s1372_s15   ;;  %s1040_s14 = sphi %s1093_s14, %s1371_s14   ;;  %s1036_s13 = sphi %s1091_s13, %s1370_s13   ;;  %s1032_s12 = sphi %s1089_s12, %s1369_s12  }
   0x7   : > { %p28_p0 = scmp.ge.s32.totalorder %s27_s18, 2  ;;  %p70_p1 = scmp.ne.s32.totalorder %s1040_s14, %s1036_s13 }
   0x8   : > { %p71_p2 = scmp.eq.s32.totalorder %s1052_s17, 0  ;;  %p774_p4 = scmp.lt.s32.totalorder %s1052_s17, 2 }
   0x9   : > { %s1375_s18 = smov (%p28_p0, %s27_s18), 0  ;;  %s168_s21 = sand.u32 1, %s1052_s17  }
   0xa   : > { %p72_p3 = por %p71_p2, %p70_p1  ;;  %s60_s20 = ssub.s32 %s1048_s16, %s1375_s18 }
   0xb   : > { %p61_p5 = scmp.eq.s32.totalorder %s60_s20, 0  ;;  %s170_s22 = sand.u32 1, %s1040_s14  }
   0xc   : > { %s712_s23 = sshll.u32 %s1048_s16, 7  ;;  %s667_s25 = sshll.u32 %s170_s22, 7 }
   0xd   : > { %s1133_s24 = scalar_select %p61_p5, %s1040_s14, %s63_s19  }
   0xe   : > { %s1140_s28 = scalar_lea.hbm %s1349_s1, %s712_s23  ;;  %p1142_p6 = pnand %p774_p4, %p72_p3 }
   0xf   : > { %s172_s30 = scalar_lea.vmem [#allocation6], %s667_s25  ;;  %s1148_s5 = scalar_lea.sflag [#allocation7], %s168_s21 }
  0x10   : > { %s1358_s29 = scalar_select %p1142_p6, 1, 0 }
  0x11   : > { %s179_s4 = sshll.u32 %s172_s30, 4  ;;  %s880_s6 = scalar_lea.hbm %s1140_s28, 2048  ;;  %s1146_s4 = int_to_ptr.vmem [resolvable:$true] %s179_s4 }
  0x12   : > { %p881_p7 = scmp.ne.s32.totalorder %s1140_s28, %s880_s6  ;;  %p1353_p8 = pneg %p1142_p6 }
  0x13   : > { %s885_s9 = scalar_lea.hbm %s1349_s1, 4096  ;;  %p886_p11 = scmp.lt.u32.totalorder %s1140_s28, %s1349_s1 }
  0x14   : > { %p883_p9 = pnand %p1353_p8, %p881_p7  ;;  %p887_p12 = scmp.lt.u32.totalorder %s885_s9, %s880_s6 }
  0x15   : > { %p889_p0 = scmp.lt.u32.totalorder %s880_s6, %s1140_s28 }
  0x16   : > { %p884_p10 = pneg %p883_p9  ;;  %p888_p13 = por %p887_p12, %p886_p11 }
  0x18   : > { %p890_p1 = por %p889_p0, %p888_p13 }
  0x1a   : > { %p891_p2 = pnand %p890_p1, %p884_p10 }
  0x1c   : > { %894 = shalt.err (!%p891_p2)
}
  0x1d   : > { %s895_s19 = scalar_lea.vmem %s1146_s4, 2048  ;;  %s1054_s20 = smov [#allocation6]  }
  0x1e   : > { %p896_p3 = scmp.ne.s32.totalorder %s1146_s4, %s895_s19  ;;  %s900_s21 = sshll.u32 %s1054_s20, 4  ;;  %s901_s21 = int_to_ptr.vmem [resolvable:$false] %s900_s21 }
  0x1f   : > { %s902_s23 = scalar_lea.vmem %s901_s21, 4096  ;;  %p903_p7 = scmp.lt.s32.totalorder %s1146_s4, %s901_s21 }
  0x20   : > { %p898_p4 = pnand %p896_p3, %p1353_p8  ;;  %p904_p9 = scmp.lt.s32.totalorder %s902_s23, %s895_s19 }
  0x22   : > { %p899_p5 = pneg %p898_p4  ;;  %p905_p11 = por %p904_p9, %p903_p7 }
  0x24   : > { %p906_p12 = pnand %p905_p11, %p899_p5 }
  0x26   : > { %909 = shalt.err (!%p906_p12)
}
  0x27   : > { %s1055_s25 = smov 256   ;;  %s1056_s26 = smov 128  }
  0x28   : > { %s1057_s27 = smov 8   ;;  %s1177_s30 = sadd.s32 4294967295, %s1052_s17  }
  0x29   : > { %769 = dma.hbm_to_vmem [thread:$0]  (!%p1142_p6), %s1140_s28, 2048, %s1146_s4, %s1148_s5, %s1055_s25, %s1056_s26, %s1057_s27  }
  0x2a   : > { %p76_p10 = scmp.ne.s32.totalorder %s1036_s13, %s1032_s12  ;;  %p1352_p13 = scmp.eq.s32.totalorder %s1177_s30, 0 }
  0x2b   : > { %p664_p0 = scmp.ge.s32.totalorder %s1052_s17, 1  ;;  %p139_p1 = scmp.lt.s32.totalorder %s1052_s17, 3 }
  0x2c   : > { %p1186_p2 = por %p1352_p13, %p76_p10  ;;  %s1058_s28 = smov [#allocation3]  }
  0x2d   : > { %p1190_p3 = pnand %p664_p0, %p139_p1  ;;  %s154_s4 = sshll.u32 %s1058_s28, 4  ;;  %s1194_s4 = int_to_ptr.vmem [resolvable:$true] %s154_s4 }
  0x2e   : > { %s1359_s6 = scalar_select %p1186_p2, 1, 0 }
  0x2f   : > { %s1360_s7 = scalar_select %p1190_p3, 1, 0 }
  0x30   : > { %p762_p4 = pneg %p1190_p3  ;;  %s670_s12 = sshll.u32 %s170_s22, 6 }
  0x31   : > { %s713_s8 = sshll.u32 %s1048_s16, 10  ;;  %s193_s20 = scalar_lea.vmem [#allocation8], %s670_s12 }
  0x32   : > { %p1203_p5 = pnand %p762_p4, %p1352_p13  ;;  %s1210_s19 = scalar_lea.hbm %s1350_s2, %s713_s8 }
  0x33   : > { %s200_s21 = sshll.u32 %s193_s20, 4  ;;  %s910_s22 = scalar_lea.hbm %s1348_s0, 128  ;;  %s1212_s21 = int_to_ptr.vmem [resolvable:$true] %s200_s21 }
  0x34   : > { %p911_p7 = scmp.ne.s32.totalorder %s1348_s0, %s910_s22  ;;  %p912_p9 = pneg %p1203_p5 }
  0x35   : > { %p917_p10 = scmp.lt.u32.totalorder %s910_s22, %s1348_s0 }
  0x36   : > { %p913_p11 = pnand %p912_p9, %p911_p7 }
  0x38   : > { %p914_p12 = pneg %p913_p11 }
  0x3a   : > { %p919_p0 = pnand %p917_p10, %p914_p12 }
  0x3c   : > { %922 = shalt.err (!%p919_p0)
}
  0x3d   : > { %s923_s12 = scalar_lea.vmem %s1194_s4, 128  ;;  %p931_p8 = scmp.lt.s32.totalorder %s1194_s4, %s1194_s4 }
  0x3e   : > { %p924_p1 = scmp.ne.s32.totalorder %s1194_s4, %s923_s12  ;;  %p932_p2 = scmp.lt.s32.totalorder %s923_s12, %s923_s12 }
  0x40   : > { %p926_p4 = pnand %p924_p1, %p912_p9  ;;  %p933_p3 = por %p932_p2, %p931_p8 }
  0x42   : > { %p927_p13 = pneg %p926_p4 }
  0x44   : > { %p934_p6 = pnand %p933_p3, %p927_p13 }
  0x46   : > { %937 = shalt.err (!%p934_p6)
}
  0x47   : > { %s1059_s8 = smov 64   ;;  %s1060_s11 = smov 4  }
  0x48   : > { %765 = dma.hbm_to_vmem [thread:$0]  (!%p1203_p5), %s1348_s0, 128, %s1194_s4, [#allocation4], %s1059_s8, %s1059_s8, %s1060_s11  }
  0x49   : > { %s938_s25 = scalar_lea.hbm %s1210_s19, 1024  ;;  %p1362_p6 = scmp.ne.s32.totalorder %s1358_s29, 0 }
  0x4a   : > { %p939_p8 = scmp.ne.s32.totalorder %s1210_s19, %s938_s25  ;;  %s943_s27 = scalar_lea.hbm %s1350_s2, 2048 }
  0x4b   : > { %p1363_p13 = pneg %p1362_p6  ;;  %p944_p7 = scmp.lt.u32.totalorder %s1210_s19, %s1350_s2 }
  0x4c   : > { %p945_p9 = scmp.lt.u32.totalorder %s943_s27, %s938_s25  ;;  %p947_p12 = scmp.lt.u32.totalorder %s938_s25, %s1210_s19 }
  0x4d   : > { %p941_p2 = pnand %p939_p8, %p1363_p13 }
  0x4e   : > { %p946_p11 = por %p945_p9, %p944_p7 }
  0x4f   : > { %p942_p3 = pneg %p941_p2 }
  0x50   : > { %p948_p10 = por %p947_p12, %p946_p11 }
  0x52   : > { %p949_p0 = pnand %p948_p10, %p942_p3 }
  0x54   : > { %952 = shalt.err (!%p949_p0)
}
  0x55   : > { %s953_s4 = scalar_lea.vmem %s1212_s21, 1024  ;;  %p1364_p1 = pmov %p1363_p13 }
  0x56   : > { %p954_p5 = scmp.ne.s32.totalorder %s1212_s21, %s953_s4  ;;  %s1061_s9 = smov [#allocation8]  }
  0x57   : > { %s958_s12 = sshll.u32 %s1061_s9, 4  ;;  %s959_s12 = int_to_ptr.vmem [resolvable:$false] %s958_s12 }
  0x58   : > { %p956_p4 = pnand %p954_p5, %p1364_p1  ;;  %s960_s20 = scalar_lea.vmem %s959_s12, 2048 }
  0x59   : > { %p961_p13 = scmp.lt.s32.totalorder %s1212_s21, %s959_s12  ;;  %p962_p2 = scmp.lt.s32.totalorder %s960_s20, %s953_s4 }
  0x5a   : > { %p957_p8 = pneg %p956_p4 }
  0x5b   : > { %p963_p7 = por %p962_p2, %p961_p13 }
  0x5d   : > { %p964_p9 = pnand %p963_p7, %p957_p8 }
  0x5f   : > { %967 = shalt.err (!%p964_p9)
}
  0x60   : > { %772 = dma.hbm_to_vmem [thread:$0]  (!%p1362_p6), %s1210_s19, 1024, %s1212_s21, %s1148_s5, %s1059_s8, %s1059_s8, %s1060_s11  }
  0x61   : > { %p1365_p3 = scmp.ne.s32.totalorder %s1360_s7, 0 }
  0x62   : > { %p1366_p11 = scmp.eq.s32.totalorder (!%p1365_p3), %s1177_s30, 0 }
  0x63   : > { %212 = sbr.rel (%p1365_p3) target bundleno = 653 (0x28d), region = 32 }
  0x6a   : > { %1019 = dma.done.wait (%p1366_p11), [#allocation4], 128   ;;  %p1367_p12 = pmov %p1366_p11 }
  0x6b   : > { %s218_s29 = sand.u32 1, %s1177_s30   ;;  %s220_s23 = sand.u32 1, %s1036_s13  }
  0x6c   : > { %1021 = vsyncadd (%p1367_p12), [#allocation4], 4294967168  ;;  %s675_s25 = sshll.u32 %s220_s23, 7  ;;  %s219_s22 = scalar_lea.sflag [#allocation7], %s218_s29 }
  0x6d   : > { %s1273_s26 = scalar_lea.vmem [#allocation6], %s675_s25  ;;  %p1368_p10 = scmp.ne.s32.totalorder %s1359_s6, 0 }
  0x6f   : > { %1023 = dma.done.wait (%p1368_p10), %s219_s22, 3072  }
  0x70   : > { %1025 = vsyncadd (%p1368_p10), %s219_s22, 4294964224  ;;  %s676_s5 = sshll.u32 %s220_s23, 6  ;;  %p677_p6 = scmp.ne.s32.totalorder %s1044_s15, 0 }
  0x71   : > { %s1279_s7 = scalar_lea.vmem [#allocation8], %s676_s5  ;;  %v1062_v0 = vmov (!%p677_p6), 0.0  }
  0x72   : > { %262 = sbr.rel (%p677_p6) target bundleno = 121 (0x79), region = 48  ;;  %263 = vst [vmem:[#allocation2] sm:$0xff] (!%p677_p6), %v1062_v0  ;;  %264 = vst [vmem:[#allocation2 + $0x8] sm:$0xff] (!%p677_p6), %v1062_v0 }
  0x79 PF: > { %v839_v1 = vld [vmem:[%s1273_s26 + $0x4] ss:$8 sps:$4 sm:$0xff]   ;;  %v841_v2 = vld [vmem:[%s1273_s26] ss:$8 sps:$4 sm:$0xff]   ;;  %v1063_v3 = vmov 0   ;;  %v863_v18 = vld [vmem:[#allocation3] sm:$0xff]  }
  0x7a   : > { %401 = vmatprep.mubr.bf16.mxu0 %v1063_v3  ;;  %369 = vmatprep.subr.bf16.mxu0 %v839_v1  ;;  %v842_v4 = vld [vmem:[%s1273_s26 + $0x14] ss:$8 sps:$4 sm:$0xff]   ;;  %v844_v5 = vld [vmem:[%s1273_s26 + $0x10] ss:$8 sps:$4 sm:$0xff]   ;;  %v845_v6 = vld [vmem:[%s1273_s26 + $0x24] ss:$8 sps:$4 sm:$0xff]  }
  0x7b   : > { %370 = vmatpush1.bf16.msra.mxu0 %v841_v2  ;;  %v847_v7 = vld [vmem:[%s1273_s26 + $0x20] ss:$8 sps:$4 sm:$0xff]   ;;  %v848_v8 = vld [vmem:[%s1273_s26 + $0x34] ss:$8 sps:$4 sm:$0xff]   ;;  %v850_v9 = vld [vmem:[%s1273_s26 + $0x30] ss:$8 sps:$4 sm:$0xff]  }
  0x7c   : > { %371 = vmatprep.subr.bf16.mxu0 %v842_v4  ;;  %v851_v10 = vld [vmem:[%s1273_s26 + $0x44] ss:$8 sps:$4 sm:$0xff]   ;;  %v853_v11 = vld [vmem:[%s1273_s26 + $0x40] ss:$8 sps:$4 sm:$0xff]   ;;  %v854_v12 = vld [vmem:[%s1273_s26 + $0x54] ss:$8 sps:$4 sm:$0xff]  }
  0x7d   : > { %v856_v13 = vld [vmem:[%s1273_s26 + $0x50] ss:$8 sps:$4 sm:$0xff]   ;;  %v857_v14 = vld [vmem:[%s1273_s26 + $0x64] ss:$8 sps:$4 sm:$0xff]   ;;  %v859_v15 = vld [vmem:[%s1273_s26 + $0x60] ss:$8 sps:$4 sm:$0xff]  }
  0x7e   : > { %v860_v16 = vld [vmem:[%s1273_s26 + $0x74] ss:$8 sps:$4 sm:$0xff]   ;;  %v862_v17 = vld [vmem:[%s1273_s26 + $0x70] ss:$8 sps:$4 sm:$0xff]   ;;  %v864_v19 = vld [vmem:[%s1279_s7] sm:$0xff]   ;;  %v1064_v20 = vmov 0.0  }
  0x7f   : > { %372 = vmatpush1.bf16.msra.mxu0 %v844_v5  ;;  %730 = vmatprep.subr.bf16.mxu1 %v1064_v20  ;;  %v865_v21 = vld [vmem:[%s1279_s7 + $0x8] sm:$0xff]   ;;  %v866_v22 = vld [vmem:[%s1279_s7 + $0x10] sm:$0xff]   ;;  %v867_v23 = vld [vmem:[%s1279_s7 + $0x18] sm:$0xff]   ;;  %vm1065_vm0 = vmmov 0   ;;  %p705_p0 = scmp.ne.s32.totalorder %s1044_s15, 1 }
  0x80   : > { %373 = vmatprep.subr.bf16.mxu0 %v845_v6  ;;  %731 = vmatpush3.bf16.msra.mxu1 %v864_v19  ;;  %v868_v24 = vld [vmem:[%s1279_s7 + $0x20] sm:$0xff]   ;;  %v869_v25 = vld [vmem:[%s1279_s7 + $0x28] sm:$0xff]   ;;  %v870_v26 = vld [vmem:[%s1279_s7 + $0x30] sm:$0xff]  }
  0x81   : > { %732 = vmatprep.subr.bf16.mxu1 %v1064_v20  ;;  %v871_v27 = vld [vmem:[%s1279_s7 + $0x38] sm:$0xff]   ;;  %746 = vmatprep.mubr.msk.bf16.mxu1 %vm1065_vm0, %v1064_v20  ;;  %v428_v45 = vld [vmem:[#allocation2] sm:$0xff]  ;;  %v429_v47 = vld [vmem:[#allocation2 + $0x8] sm:$0xff] }
  0x83   : > { %374 = vmatpush1.bf16.msra.mxu0 %v847_v7 }
  0x84   : > { %375 = vmatprep.subr.bf16.mxu0 %v848_v8  ;;  %733 = vmatpush3.bf16.msra.mxu1 %v865_v21 }
  0x85   : > { %734 = vmatprep.subr.bf16.mxu1 %v1064_v20 }
  0x87   : > { %376 = vmatpush1.bf16.msra.mxu0 %v850_v9 }
  0x88   : > { %377 = vmatprep.subr.bf16.mxu0 %v851_v10  ;;  %735 = vmatpush3.bf16.msra.mxu1 %v866_v22 }
  0x89   : > { %736 = vmatprep.subr.bf16.mxu1 %v1064_v20 }
  0x8b   : > { %378 = vmatpush1.bf16.msra.mxu0 %v853_v11 }
  0x8c   : > { %379 = vmatprep.subr.bf16.mxu0 %v854_v12  ;;  %737 = vmatpush3.bf16.msra.mxu1 %v867_v23 }
  0x8d   : > { %738 = vmatprep.subr.bf16.mxu1 %v1064_v20 }
  0x8f   : > { %380 = vmatpush1.bf16.msra.mxu0 %v856_v13 }
  0x90   : > { %381 = vmatprep.subr.bf16.mxu0 %v857_v14  ;;  %739 = vmatpush3.bf16.msra.mxu1 %v868_v24 }
  0x91   : > { %740 = vmatprep.subr.bf16.mxu1 %v1064_v20 }
  0x93   : > { %382 = vmatpush1.bf16.msra.mxu0 %v859_v15 }
  0x94   : > { %383 = vmatprep.subr.bf16.mxu0 %v860_v16  ;;  %741 = vmatpush3.bf16.msra.mxu1 %v869_v25 }
  0x95   : > { %742 = vmatprep.subr.bf16.mxu1 %v1064_v20 }
  0x97   : > { %384 = vmatpush1.bf16.msra.mxu0 %v862_v17 }
  0x98   : > { %743 = vmatpush3.bf16.msra.mxu1 %v870_v26 }
  0x99   : > { %744 = vmatprep.subr.bf16.mxu1 %v1064_v20 }
  0x9a   : > { %402 = vmatmul.mubr.bf16.vlgmr.msra.gmra.mrb[0].mxu0 %v863_v18 }
  0x9c   : > { %745 = vmatpush3.bf16.msra.mxu1 %v871_v27 }
 0x16d   : > { %v403_v28 = vpop.f32.mrb[0].mxu0 }
 0x16e   : > { %v695_v29 = vmul.f32 -1.442695, %v403_v28  ;;  %v405_v30 = vpop.f32.mrb[1].mxu0 }
 0x16f   : > { %v407_v31 = vpop.f32.mrb[2].mxu0 }
 0x170   : > { %872 = vpow2.f32 %v695_v29  ;;  %v696_v32 = vmul.f32 -1.442695, %v407_v31  ;;  %v409_v33 = vpop.f32.mrb[3].mxu0 }
 0x172   : > { %874 = vpow2.f32 %v696_v32 }
 0x17a   : > { %v873_v34 = vpop.eup %872 }
 0x17b   : > { %v418_v35 = vadd.f32 1.0, %v873_v34 }
 0x17c   : > { %v875_v36 = vpop.eup %874 }
 0x17d   : > { %876 = vrcp.f32 %v418_v35  ;;  %v419_v37 = vadd.f32 1.0, %v875_v36 }
 0x17f   : > { %878 = vrcp.f32 %v419_v37 }
 0x187   : > { %v877_v38 = vpop.eup %876 }
 0x188   : > { %v424_v39 = vmul.f32 %v877_v38, %v403_v28 }
 0x189   : > { %v879_v40 = vpop.eup %878 }
 0x18a   : > { %v426_v41 = vmul.f32 %v424_v39, %v405_v30  ;;  %v425_v42 = vmul.f32 %v879_v40, %v407_v31 }
 0x18c   : > { %v427_v43 = vmul.f32 %v425_v42, %v409_v33 }
 0x18e   : > { %v430_v44 = vpack.c.bf16 %v427_v43, %v426_v41 }
 0x190   : > { %747 = vmatmul.mubr.bf16.vlgmr.msra.gmra.mrb[0].mxu1 %v430_v44 }
 0x262   : > { %543 = sbr.rel (%p705_p0) target bundleno = 627 (0x273), region = 52 }
 0x263   : > { %v529_v46 = vpop.f32.mrb[0].mxu1 }
 0x264   : > { %v536_v48 = vadd.f32 %v529_v46, %v428_v45  ;;  %v748_v49 = vpop.f32.mrb[1].mxu1 }
 0x265   : > { %v532_v50 = vpop.f32.mrb[2].mxu1 }
 0x266   : > { %538 = vst [vmem:[#allocation2] sm:$0xff] %v536_v48  ;;  %v537_v51 = vadd.f32 %v532_v50, %v429_v47  ;;  %v749_v52 = vpop.f32.mrb[3].mxu1 }
 0x268   : > { %539 = vst [vmem:[#allocation2 + $0x8] sm:$0xff] %v537_v51 }
 0x26d   : > { %v544_v53 = vld [vmem:[#allocation2] sm:$0xff] }
 0x26f   : > { %v545_v54 = vld [vmem:[#allocation2 + $0x8] sm:$0xff] }
 0x270   : > { %v719_v55 = vpack.c.bf16 %v545_v54, %v544_v53 }
 0x272   : > { %720 = vst [vmem:[#allocation9] sm:$0xff] %v719_v55  }
 0x273 PF: > { %p776_p5 = scmp.eq.s32.totalorder %s1177_s30, 1  ;;  %s1066_s6 = smov [#allocation9]  }
 0x274   : > { %s565_s19 = sshll.u32 %s1066_s6, 4  ;;  %s566_s19 = int_to_ptr.vmem [resolvable:$true] %s565_s19 }
 0x275   : > { %s968_s21 = scalar_lea.vmem %s566_s19, 128  ;;  %p975_p13 = scmp.lt.s32.totalorder %s566_s19, %s566_s19 }
 0x276   : > { %p969_p1 = scmp.ne.s32.totalorder %s566_s19, %s968_s21  ;;  %p976_p2 = scmp.lt.s32.totalorder %s968_s21, %s968_s21 }
 0x278   : > { %p970_p4 = pnand %p969_p1, %p776_p5  ;;  %p977_p7 = por %p976_p2, %p975_p13 }
 0x27a   : > { %p971_p8 = pneg %p970_p4 }
 0x27c   : > { %p978_p9 = pnand %p977_p7, %p971_p8 }
 0x27e   : > { %981 = shalt.err (!%p978_p9)
}
 0x27f   : > { %s982_s11 = scalar_lea.hbm %s1351_s3, 128 }
 0x280   : > { %p983_p3 = scmp.ne.s32.totalorder %s1351_s3, %s982_s11  ;;  %p988_p10 = scmp.lt.u32.totalorder %s982_s11, %s1351_s3 }
 0x282   : > { %p984_p11 = pnand %p983_p3, %p776_p5 }
 0x284   : > { %p985_p12 = pneg %p984_p11 }
 0x286   : > { %p990_p6 = pnand %p988_p10, %p985_p12 }
 0x288   : > { %993 = shalt.err (!%p990_p6)
}
 0x289   : > { %s1067_s9 = smov 64   ;;  %s1068_s12 = smov 4  }
 0x28a   : > { %759 = dma.vmem_to_hbm [thread:$0]  (%p776_p5), %s566_s19, 128, %s1351_s3, [#allocation5], %s1067_s9, %s1067_s9, %s1068_s12  }
 0x28b   : > { %1027 = dma.done.wait (%p776_p5), [#allocation5], 128  }
 0x28c   : > { %1029 = vsyncadd (%p776_p5), [#allocation5], 4294967168 }
 0x28d PF: > { %s18_s17 = sadd.s32 1, %s1052_s17   ;;  %s1369_s12 = smov %s1036_s13 }
 0x28e   : > { %p15_p0 = scmp.ge.s32.totalorder %s18_s17, 4   ;;  %s1370_s13 = smov %s1040_s14 }
 0x28f   : > { %s1371_s14 = smov %s1133_s24  ;;  %s1372_s15 = smov %s1048_s16 }
 0x290   : > { %s1373_s16 = smov %s1375_s18  ;;  %17 = sbr.rel (!%p15_p0) target bundleno = 6 (0x6), region = 95 }
 0x297   :  { %581 = vsyncpa [#allocation4], 1 }
 0x298   :  { %583 = vsyncpa [#allocation4 + $0x1], 1 }
 0x299   :  { %584 = vsyncpa [#allocation7], 1 }
 0x29a   :  { %586 = vsyncpa [#allocation7 + $0x1], 1 }
 0x29b   :  { %587 = vsyncpa [#allocation5], 1 }
 0x29c   :  { %589 = vsyncpa [#allocation5 + $0x1], 1 }

// kernel: tpu_custom_call.1
= control target key start
LH: loop header
LB: loop body
LE: loop exit
PB: predicated region body
PF: predicated region fallthrough
CT: control target
= control target key end

     0   :  { %8 = vsyncpa [#allocation4], 0  ;;  %s1348_s0 = inlined_call_operand.hbm [shape: bf16[16,128], index: 0, kind: input, shape index: {}]   ;;  %s1349_s1 = inlined_call_operand.hbm [shape: bf16[128,512], index: 1, kind: input, shape index: {}]   ;;  %s1350_s2 = inlined_call_operand.hbm [shape: bf16[256,128], index: 2, kind: input, shape index: {}]   ;;  %s1351_s3 = inlined_call_operand.hbm [shape: bf16[16,128], index: 3, kind: output, shape index: {}]  }
   0x1   :  { %9 = vsyncpa [#allocation7], 0 }
   0x2   :  { %11 = vsyncpa [#allocation7 + $0x1], 0 }
   0x3   :  { %12 = vsyncpa [#allocation5], 0  ;;  %s1089_s12 = smov 0   ;;  %s1091_s13 = smov 0  }
   0x4   :  { %s1093_s14 = smov 0   ;;  %s1095_s15 = smov 0  }
   0x5   :  { %s1097_s16 = smov 0   ;;  %s1099_s17 = smov 0  }
   0x6 LB: > { %s27_s18 = sadd.s32 1, %s1048_s16  ;;  %s63_s19 = sadd.s32 1, %s1040_s14  ;;  %s1052_s17 = sphi %s1099_s17, %s18_s17   ;;  %s1048_s16 = sphi %s1097_s16, %s1373_s16   ;;  %s1044_s15 = sphi %s1095_s15, %s1372_s15   ;;  %s1040_s14 = sphi %s1093_s14, %s1371_s14   ;;  %s1036_s13 = sphi %s1091_s13, %s1370_s13   ;;  %s1032_s12 = sphi %s1089_s12, %s1369_s12  }
   0x7   : > { %p28_p0 = scmp.ge.s32.totalorder %s27_s18, 2  ;;  %p70_p1 = scmp.ne.s32.totalorder %s1040_s14, %s1036_s13 }
   0x8   : > { %p71_p2 = scmp.eq.s32.totalorder %s1052_s17, 0  ;;  %p774_p4 = scmp.lt.s32.totalorder %s1052_s17, 2 }
   0x9   : > { %s1375_s18 = smov (%p28_p0, %s27_s18), 0  ;;  %s168_s21 = sand.u32 1, %s1052_s17  }
   0xa   : > { %p72_p3 = por %p71_p2, %p70_p1  ;;  %s60_s20 = ssub.s32 %s1048_s16, %s1375_s18 }
   0xb   : > { %p61_p5 = scmp.eq.s32.totalorder %s60_s20, 0  ;;  %s170_s22 = sand.u32 1, %s1040_s14  }
   0xc   : > { %s712_s23 = sshll.u32 %s1048_s16, 7  ;;  %s667_s25 = sshll.u32 %s170_s22, 7 }
   0xd   : > { %s1133_s24 = scalar_select %p61_p5, %s1040_s14, %s63_s19  }
   0xe   : > { %s1140_s28 = scalar_lea.hbm %s1349_s1, %s712_s23  ;;  %p1142_p6 = pnand %p774_p4, %p72_p3 }
   0xf   : > { %s172_s30 = scalar_lea.vmem [#allocation6], %s667_s25  ;;  %s1148_s5 = scalar_lea.sflag [#allocation7], %s168_s21 }
  0x10   : > { %s1358_s29 = scalar_select %p1142_p6, 1, 0 }
  0x11   : > { %s179_s4 = sshll.u32 %s172_s30, 4  ;;  %s880_s6 = scalar_lea.hbm %s1140_s28, 2048  ;;  %s1146_s4 = int_to_ptr.vmem [resolvable:$true] %s179_s4 }
  0x12   : > { %p881_p7 = scmp.ne.s32.totalorder %s1140_s28, %s880_s6  ;;  %p1353_p8 = pneg %p1142_p6 }
  0x13   : > { %s885_s9 = scalar_lea.hbm %s1349_s1, 4096  ;;  %p886_p11 = scmp.lt.u32.totalorder %s1140_s28, %s1349_s1 }
  0x14   : > { %p883_p9 = pnand %p1353_p8, %p881_p7  ;;  %p887_p12 = scmp.lt.u32.totalorder %s885_s9, %s880_s6 }
  0x15   : > { %p889_p0 = scmp.lt.u32.totalorder %s880_s6, %s1140_s28 }
  0x16   : > { %p884_p10 = pneg %p883_p9  ;;  %p888_p13 = por %p887_p12, %p886_p11 }
  0x18   : > { %p890_p1 = por %p889_p0, %p888_p13 }
  0x1a   : > { %p891_p2 = pnand %p890_p1, %p884_p10 }
  0x1c   : > { %894 = shalt.err (!%p891_p2)
}
  0x1d   : > { %s895_s19 = scalar_lea.vmem %s1146_s4, 2048  ;;  %s1054_s20 = smov [#allocation6]  }
  0x1e   : > { %p896_p3 = scmp.ne.s32.totalorder %s1146_s4, %s895_s19  ;;  %s900_s21 = sshll.u32 %s1054_s20, 4  ;;  %s901_s21 = int_to_ptr.vmem [resolvable:$false] %s900_s21 }
  0x1f   : > { %s902_s23 = scalar_lea.vmem %s901_s21, 4096  ;;  %p903_p7 = scmp.lt.s32.totalorder %s1146_s4, %s901_s21 }
  0x20   : > { %p898_p4 = pnand %p896_p3, %p1353_p8  ;;  %p904_p9 = scmp.lt.s32.totalorder %s902_s23, %s895_s19 }
  0x22   : > { %p899_p5 = pneg %p898_p4  ;;  %p905_p11 = por %p904_p9, %p903_p7 }
  0x24   : > { %p906_p12 = pnand %p905_p11, %p899_p5 }
  0x26   : > { %909 = shalt.err (!%p906_p12)
}
  0x27   : > { %s1055_s25 = smov 256   ;;  %s1056_s26 = smov 128  }
  0x28   : > { %s1057_s27 = smov 8   ;;  %s1177_s30 = sadd.s32 4294967295, %s1052_s17  }
  0x29   : > { %769 = dma.hbm_to_vmem [thread:$0]  (!%p1142_p6), %s1140_s28, 2048, %s1146_s4, %s1148_s5, %s1055_s25, %s1056_s26, %s1057_s27  }
  0x2a   : > { %p76_p10 = scmp.ne.s32.totalorder %s1036_s13, %s1032_s12  ;;  %p1352_p13 = scmp.eq.s32.totalorder %s1177_s30, 0 }
  0x2b   : > { %p664_p0 = scmp.ge.s32.totalorder %s1052_s17, 1  ;;  %p139_p1 = scmp.lt.s32.totalorder %s1052_s17, 3 }
  0x2c   : > { %p1186_p2 = por %p1352_p13, %p76_p10  ;;  %s1058_s28 = smov [#allocation3]  }
  0x2d   : > { %p1190_p3 = pnand %p664_p0, %p139_p1  ;;  %s154_s4 = sshll.u32 %s1058_s28, 4  ;;  %s1194_s4 = int_to_ptr.vmem [resolvable:$true] %s154_s4 }
  0x2e   : > { %s1359_s6 = scalar_select %p1186_p2, 1, 0 }
  0x2f   : > { %s1360_s7 = scalar_select %p1190_p3, 1, 0 }
  0x30   : > { %p762_p4 = pneg %p1190_p3  ;;  %s670_s12 = sshll.u32 %s170_s22, 6 }
  0x31   : > { %s713_s8 = sshll.u32 %s1048_s16, 10  ;;  %s193_s20 = scalar_lea.vmem [#allocation8], %s670_s12 }
  0x32   : > { %p1203_p5 = pnand %p762_p4, %p1352_p13  ;;  %s1210_s19 = scalar_lea.hbm %s1350_s2, %s713_s8 }
  0x33   : > { %s200_s21 = sshll.u32 %s193_s20, 4  ;;  %s910_s22 = scalar_lea.hbm %s1348_s0, 128  ;;  %s1212_s21 = int_to_ptr.vmem [resolvable:$true] %s200_s21 }
  0x34   : > { %p911_p7 = scmp.ne.s32.totalorder %s1348_s0, %s910_s22  ;;  %p912_p9 = pneg %p1203_p5 }
  0x35   : > { %p917_p10 = scmp.lt.u32.totalorder %s910_s22, %s1348_s0 }
  0x36   : > { %p913_p11 = pnand %p912_p9, %p911_p7 }
  0x38   : > { %p914_p12 = pneg %p913_p11 }
  0x3a   : > { %p919_p0 = pnand %p917_p10, %p914_p12 }
  0x3c   : > { %922 = shalt.err (!%p919_p0)
}
  0x3d   : > { %s923_s12 = scalar_lea.vmem %s1194_s4, 128  ;;  %p931_p8 = scmp.lt.s32.totalorder %s1194_s4, %s1194_s4 }
  0x3e   : > { %p924_p1 = scmp.ne.s32.totalorder %s1194_s4, %s923_s12  ;;  %p932_p2 = scmp.lt.s32.totalorder %s923_s12, %s923_s12 }
  0x40   : > { %p926_p4 = pnand %p924_p1, %p912_p9  ;;  %p933_p3 = por %p932_p2, %p931_p8 }
  0x42   : > { %p927_p13 = pneg %p926_p4 }
  0x44   : > { %p934_p6 = pnand %p933_p3, %p927_p13 }
  0x46   : > { %937 = shalt.err (!%p934_p6)
}
  0x47   : > { %s1059_s8 = smov 64   ;;  %s1060_s11 = smov 4  }
  0x48   : > { %765 = dma.hbm_to_vmem [thread:$0]  (!%p1203_p5), %s1348_s0, 128, %s1194_s4, [#allocation4], %s1059_s8, %s1059_s8, %s1060_s11  }
  0x49   : > { %s938_s25 = scalar_lea.hbm %s1210_s19, 1024  ;;  %p1362_p6 = scmp.ne.s32.totalorder %s1358_s29, 0 }
  0x4a   : > { %p939_p8 = scmp.ne.s32.totalorder %s1210_s19, %s938_s25  ;;  %s943_s27 = scalar_lea.hbm %s1350_s2, 2048 }
  0x4b   : > { %p1363_p13 = pneg %p1362_p6  ;;  %p944_p7 = scmp.lt.u32.totalorder %s1210_s19, %s1350_s2 }
  0x4c   : > { %p945_p9 = scmp.lt.u32.totalorder %s943_s27, %s938_s25  ;;  %p947_p12 = scmp.lt.u32.totalorder %s938_s25, %s1210_s19 }
  0x4d   : > { %p941_p2 = pnand %p939_p8, %p1363_p13 }
  0x4e   : > { %p946_p11 = por %p945_p9, %p944_p7 }
  0x4f   : > { %p942_p3 = pneg %p941_p2 }
  0x50   : > { %p948_p10 = por %p947_p12, %p946_p11 }
  0x52   : > { %p949_p0 = pnand %p948_p10, %p942_p3 }
  0x54   : > { %952 = shalt.err (!%p949_p0)
}
  0x55   : > { %s953_s4 = scalar_lea.vmem %s1212_s21, 1024  ;;  %p1364_p1 = pmov %p1363_p13 }
  0x56   : > { %p954_p5 = scmp.ne.s32.totalorder %s1212_s21, %s953_s4  ;;  %s1061_s9 = smov [#allocation8]  }
  0x57   : > { %s958_s12 = sshll.u32 %s1061_s9, 4  ;;  %s959_s12 = int_to_ptr.vmem [resolvable:$false] %s958_s12 }
  0x58   : > { %p956_p4 = pnand %p954_p5, %p1364_p1  ;;  %s960_s20 = scalar_lea.vmem %s959_s12, 2048 }
  0x59   : > { %p961_p13 = scmp.lt.s32.totalorder %s1212_s21, %s959_s12  ;;  %p962_p2 = scmp.lt.s32.totalorder %s960_s20, %s953_s4 }
  0x5a   : > { %p957_p8 = pneg %p956_p4 }
  0x5b   : > { %p963_p7 = por %p962_p2, %p961_p13 }
  0x5d   : > { %p964_p9 = pnand %p963_p7, %p957_p8 }
  0x5f   : > { %967 = shalt.err (!%p964_p9)
}
  0x60   : > { %772 = dma.hbm_to_vmem [thread:$0]  (!%p1362_p6), %s1210_s19, 1024, %s1212_s21, %s1148_s5, %s1059_s8, %s1059_s8, %s1060_s11  }
  0x61   : > { %p1365_p3 = scmp.ne.s32.totalorder %s1360_s7, 0 }
  0x62   : > { %p1366_p11 = scmp.eq.s32.totalorder (!%p1365_p3), %s1177_s30, 0 }
  0x63   : > { %212 = sbr.rel (%p1365_p3) target bundleno = 653 (0x28d), region = 32 }
  0x6a   : > { %1019 = dma.done.wait (%p1366_p11), [#allocation4], 128   ;;  %p1367_p12 = pmov %p1366_p11 }
  0x6b   : > { %s218_s29 = sand.u32 1, %s1177_s30   ;;  %s220_s23 = sand.u32 1, %s1036_s13  }
  0x6c   : > { %1021 = vsyncadd (%p1367_p12), [#allocation4], 4294967168  ;;  %s675_s25 = sshll.u32 %s220_s23, 7  ;;  %s219_s22 = scalar_lea.sflag [#allocation7], %s218_s29 }
  0x6d   : > { %s1273_s26 = scalar_lea.vmem [#allocation6], %s675_s25  ;;  %p1368_p10 = scmp.ne.s32.totalorder %s1359_s6, 0 }
  0x6f   : > { %1023 = dma.done.wait (%p1368_p10), %s219_s22, 3072  }
  0x70   : > { %1025 = vsyncadd (%p1368_p10), %s219_s22, 4294964224  ;;  %s676_s5 = sshll.u32 %s220_s23, 6  ;;  %p677_p6 = scmp.ne.s32.totalorder %s1044_s15, 0 }
  0x71   : > { %s1279_s7 = scalar_lea.vmem [#allocation8], %s676_s5  ;;  %v1062_v0 = vmov (!%p677_p6), 0.0  }
  0x72   : > { %262 = sbr.rel (%p677_p6) target bundleno = 121 (0x79), region = 48  ;;  %263 = vst [vmem:[#allocation2] sm:$0xff] (!%p677_p6), %v1062_v0  ;;  %264 = vst [vmem:[#allocation2 + $0x8] sm:$0xff] (!%p677_p6), %v1062_v0 }
  0x79 PF: > { %v839_v1 = vld [vmem:[%s1273_s26 + $0x4] ss:$8 sps:$4 sm:$0xff]   ;;  %v841_v2 = vld [vmem:[%s1273_s26] ss:$8 sps:$4 sm:$0xff]   ;;  %v1063_v3 = vmov 0   ;;  %v863_v18 = vld [vmem:[#allocation3] sm:$0xff]  }
  0x7a   : > { %401 = vmatprep.mubr.bf16.mxu0 %v1063_v3  ;;  %369 = vmatprep.subr.bf16.mxu0 %v839_v1  ;;  %v842_v4 = vld [vmem:[%s1273_s26 + $0x14] ss:$8 sps:$4 sm:$0xff]   ;;  %v844_v5 = vld [vmem:[%s1273_s26 + $0x10] ss:$8 sps:$4 sm:$0xff]   ;;  %v845_v6 = vld [vmem:[%s1273_s26 + $0x24] ss:$8 sps:$4 sm:$0xff]  }
  0x7b   : > { %370 = vmatpush1.bf16.msra.mxu0 %v841_v2  ;;  %v847_v7 = vld [vmem:[%s1273_s26 + $0x20] ss:$8 sps:$4 sm:$0xff]   ;;  %v848_v8 = vld [vmem:[%s1273_s26 + $0x34] ss:$8 sps:$4 sm:$0xff]   ;;  %v850_v9 = vld [vmem:[%s1273_s26 + $0x30] ss:$8 sps:$4 sm:$0xff]  }
  0x7c   : > { %371 = vmatprep.subr.bf16.mxu0 %v842_v4  ;;  %v851_v10 = vld [vmem:[%s1273_s26 + $0x44] ss:$8 sps:$4 sm:$0xff]   ;;  %v853_v11 = vld [vmem:[%s1273_s26 + $0x40] ss:$8 sps:$4 sm:$0xff]   ;;  %v854_v12 = vld [vmem:[%s1273_s26 + $0x54] ss:$8 sps:$4 sm:$0xff]  }
  0x7d   : > { %v856_v13 = vld [vmem:[%s1273_s26 + $0x50] ss:$8 sps:$4 sm:$0xff]   ;;  %v857_v14 = vld [vmem:[%s1273_s26 + $0x64] ss:$8 sps:$4 sm:$0xff]   ;;  %v859_v15 = vld [vmem:[%s1273_s26 + $0x60] ss:$8 sps:$4 sm:$0xff]  }
  0x7e   : > { %v860_v16 = vld [vmem:[%s1273_s26 + $0x74] ss:$8 sps:$4 sm:$0xff]   ;;  %v862_v17 = vld [vmem:[%s1273_s26 + $0x70] ss:$8 sps:$4 sm:$0xff]   ;;  %v864_v19 = vld [vmem:[%s1279_s7] sm:$0xff]   ;;  %v1064_v20 = vmov 0.0  }
  0x7f   : > { %372 = vmatpush1.bf16.msra.mxu0 %v844_v5  ;;  %730 = vmatprep.subr.bf16.mxu1 %v1064_v20  ;;  %v865_v21 = vld [vmem:[%s1279_s7 + $0x8] sm:$0xff]   ;;  %v866_v22 = vld [vmem:[%s1279_s7 + $0x10] sm:$0xff]   ;;  %v867_v23 = vld [vmem:[%s1279_s7 + $0x18] sm:$0xff]   ;;  %vm1065_vm0 = vmmov 0   ;;  %p705_p0 = scmp.ne.s32.totalorder %s1044_s15, 1 }
  0x80   : > { %373 = vmatprep.subr.bf16.mxu0 %v845_v6  ;;  %731 = vmatpush3.bf16.msra.mxu1 %v864_v19  ;;  %v868_v24 = vld [vmem:[%s1279_s7 + $0x20] sm:$0xff]   ;;  %v869_v25 = vld [vmem:[%s1279_s7 + $0x28] sm:$0xff]   ;;  %v870_v26 = vld [vmem:[%s1279_s7 + $0x30] sm:$0xff]  }
  0x81   : > { %732 = vmatprep.subr.bf16.mxu1 %v1064_v20  ;;  %v871_v27 = vld [vmem:[%s1279_s7 + $0x38] sm:$0xff]   ;;  %746 = vmatprep.mubr.msk.bf16.mxu1 %vm1065_vm0, %v1064_v20  ;;  %v428_v45 = vld [vmem:[#allocation2] sm:$0xff]  ;;  %v429_v47 = vld [vmem:[#allocation2 + $0x8] sm:$0xff] }
  0x83   : > { %374 = vmatpush1.bf16.msra.mxu0 %v847_v7 }
  0x84   : > { %375 = vmatprep.subr.bf16.mxu0 %v848_v8  ;;  %733 = vmatpush3.bf16.msra.mxu1 %v865_v21 }
  0x85   : > { %734 = vmatprep.subr.bf16.mxu1 %v1064_v20 }
  0x87   : > { %376 = vmatpush1.bf16.msra.mxu0 %v850_v9 }
  0x88   : > { %377 = vmatprep.subr.bf16.mxu0 %v851_v10  ;;  %735 = vmatpush3.bf16.msra.mxu1 %v866_v22 }
  0x89   : > { %736 = vmatprep.subr.bf16.mxu1 %v1064_v20 }
  0x8b   : > { %378 = vmatpush1.bf16.msra.mxu0 %v853_v11 }
  0x8c   : > { %379 = vmatprep.subr.bf16.mxu0 %v854_v12  ;;  %737 = vmatpush3.bf16.msra.mxu1 %v867_v23 }
  0x8d   : > { %738 = vmatprep.subr.bf16.mxu1 %v1064_v20 }
  0x8f   : > { %380 = vmatpush1.bf16.msra.mxu0 %v856_v13 }
  0x90   : > { %381 = vmatprep.subr.bf16.mxu0 %v857_v14  ;;  %739 = vmatpush3.bf16.msra.mxu1 %v868_v24 }
  0x91   : > { %740 = vmatprep.subr.bf16.mxu1 %v1064_v20 }
  0x93   : > { %382 = vmatpush1.bf16.msra.mxu0 %v859_v15 }
  0x94   : > { %383 = vmatprep.subr.bf16.mxu0 %v860_v16  ;;  %741 = vmatpush3.bf16.msra.mxu1 %v869_v25 }
  0x95   : > { %742 = vmatprep.subr.bf16.mxu1 %v1064_v20 }
  0x97   : > { %384 = vmatpush1.bf16.msra.mxu0 %v862_v17 }
  0x98   : > { %743 = vmatpush3.bf16.msra.mxu1 %v870_v26 }
  0x99   : > { %744 = vmatprep.subr.bf16.mxu1 %v1064_v20 }
  0x9a   : > { %402 = vmatmul.mubr.bf16.vlgmr.msra.gmra.mrb[0].mxu0 %v863_v18 }
  0x9c   : > { %745 = vmatpush3.bf16.msra.mxu1 %v871_v27 }
 0x16d   : > { %v403_v28 = vpop.f32.mrb[0].mxu0 }
 0x16e   : > { %v695_v29 = vmul.f32 -1.442695, %v403_v28  ;;  %v405_v30 = vpop.f32.mrb[1].mxu0 }
 0x16f   : > { %v407_v31 = vpop.f32.mrb[2].mxu0 }
 0x170   : > { %872 = vpow2.f32 %v695_v29  ;;  %v696_v32 = vmul.f32 -1.442695, %v407_v31  ;;  %v409_v33 = vpop.f32.mrb[3].mxu0 }
 0x172   : > { %874 = vpow2.f32 %v696_v32 }
 0x17a   : > { %v873_v34 = vpop.eup %872 }
 0x17b   : > { %v418_v35 = vadd.f32 1.0, %v873_v34 }
 0x17c   : > { %v875_v36 = vpop.eup %874 }
 0x17d   : > { %876 = vrcp.f32 %v418_v35  ;;  %v419_v37 = vadd.f32 1.0, %v875_v36 }
 0x17f   : > { %878 = vrcp.f32 %v419_v37 }
 0x187   : > { %v877_v38 = vpop.eup %876 }
 0x188   : > { %v424_v39 = vmul.f32 %v877_v38, %v403_v28 }
 0x189   : > { %v879_v40 = vpop.eup %878 }
 0x18a   : > { %v426_v41 = vmul.f32 %v424_v39, %v405_v30  ;;  %v425_v42 = vmul.f32 %v879_v40, %v407_v31 }
 0x18c   : > { %v427_v43 = vmul.f32 %v425_v42, %v409_v33 }
 0x18e   : > { %v430_v44 = vpack.c.bf16 %v427_v43, %v426_v41 }
 0x190   : > { %747 = vmatmul.mubr.bf16.vlgmr.msra.gmra.mrb[0].mxu1 %v430_v44 }
 0x262   : > { %543 = sbr.rel (%p705_p0) target bundleno = 627 (0x273), region = 52 }
 0x263   : > { %v529_v46 = vpop.f32.mrb[0].mxu1 }
 0x264   : > { %v536_v48 = vadd.f32 %v529_v46, %v428_v45  ;;  %v748_v49 = vpop.f32.mrb[1].mxu1 }
 0x265   : > { %v532_v50 = vpop.f32.mrb[2].mxu1 }
 0x266   : > { %538 = vst [vmem:[#allocation2] sm:$0xff] %v536_v48  ;;  %v537_v51 = vadd.f32 %v532_v50, %v429_v47  ;;  %v749_v52 = vpop.f32.mrb[3].mxu1 }
 0x268   : > { %539 = vst [vmem:[#allocation2 + $0x8] sm:$0xff] %v537_v51 }
 0x26d   : > { %v544_v53 = vld [vmem:[#allocation2] sm:$0xff] }
 0x26f   : > { %v545_v54 = vld [vmem:[#allocation2 + $0x8] sm:$0xff] }
 0x270   : > { %v719_v55 = vpack.c.bf16 %v545_v54, %v544_v53 }
 0x272   : > { %720 = vst [vmem:[#allocation9] sm:$0xff] %v719_v55  }
 0x273 PF: > { %p776_p5 = scmp.eq.s32.totalorder %s1177_s30, 1  ;;  %s1066_s6 = smov [#allocation9]  }
 0x274   : > { %s565_s19 = sshll.u32 %s1066_s6, 4  ;;  %s566_s19 = int_to_ptr.vmem [resolvable:$true] %s565_s19 }
 0x275   : > { %s968_s21 = scalar_lea.vmem %s566_s19, 128  ;;  %p975_p13 = scmp.lt.s32.totalorder %s566_s19, %s566_s19 }
 0x276   : > { %p969_p1 = scmp.ne.s32.totalorder %s566_s19, %s968_s21  ;;  %p976_p2 = scmp.lt.s32.totalorder %s968_s21, %s968_s21 }
 0x278   : > { %p970_p4 = pnand %p969_p1, %p776_p5  ;;  %p977_p7 = por %p976_p2, %p975_p13 }
 0x27a   : > { %p971_p8 = pneg %p970_p4 }
 0x27c   : > { %p978_p9 = pnand %p977_p7, %p971_p8 }
 0x27e   : > { %981 = shalt.err (!%p978_p9)
}
 0x27f   : > { %s982_s11 = scalar_lea.hbm %s1351_s3, 128 }
 0x280   : > { %p983_p3 = scmp.ne.s32.totalorder %s1351_s3, %s982_s11  ;;  %p988_p10 = scmp.lt.u32.totalorder %s982_s11, %s1351_s3 }
 0x282   : > { %p984_p11 = pnand %p983_p3, %p776_p5 }
 0x284   : > { %p985_p12 = pneg %p984_p11 }
 0x286   : > { %p990_p6 = pnand %p988_p10, %p985_p12 }
 0x288   : > { %993 = shalt.err (!%p990_p6)
}
 0x289   : > { %s1067_s9 = smov 64   ;;  %s1068_s12 = smov 4  }
 0x28a   : > { %759 = dma.vmem_to_hbm [thread:$0]  (%p776_p5), %s566_s19, 128, %s1351_s3, [#allocation5], %s1067_s9, %s1067_s9, %s1068_s12  }
 0x28b   : > { %1027 = dma.done.wait (%p776_p5), [#allocation5], 128  }
 0x28c   : > { %1029 = vsyncadd (%p776_p5), [#allocation5], 4294967168 }
 0x28d PF: > { %s18_s17 = sadd.s32 1, %s1052_s17   ;;  %s1369_s12 = smov %s1036_s13 }
 0x28e   : > { %p15_p0 = scmp.ge.s32.totalorder %s18_s17, 4   ;;  %s1370_s13 = smov %s1040_s14 }
 0x28f   : > { %s1371_s14 = smov %s1133_s24  ;;  %s1372_s15 = smov %s1048_s16 }
 0x290   : > { %s1373_s16 = smov %s1375_s18  ;;  %17 = sbr.rel (!%p15_p0) target bundleno = 6 (0x6), region = 95 }
 0x297   :  { %581 = vsyncpa [#allocation4], 1 }
 0x298   :  { %583 = vsyncpa [#allocation4 + $0x1], 1 }
 0x299   :  { %584 = vsyncpa [#allocation7], 1 }
 0x29a   :  { %586 = vsyncpa [#allocation7 + $0x1], 1 }
 0x29b   :  { %587 = vsyncpa [#allocation5], 1 }
 0x29c   :  { %589 = vsyncpa [#allocation5 + $0x1], 1 }

</bundles_post_ra>
